<compile_context>
chip_gen: v5e
topology: v5e:2x2
jax: 0.10.0
libtpu: 0.0.40
codegen_flags: <defaults>
</compile_context>

<pallas_src>
import functools

import jax
import jax.numpy as jnp
from jax.experimental import pallas as pl
from jax.experimental.pallas import tpu as pltpu


def _space_to_depth_kernel(x_ref, o_ref, *, bs):
    # x_ref: (Ct, H, W)          -- one channel tile of one sample
    # o_ref: (bs*bs, Ct, Ho, Wo) -- all bs*bs spatial-offset blocks for it
    Ct, H, W = x_ref.shape
    Ho, Wo = H // bs, W // bs

    # Lane-selection one-hot pattern built in-kernel (no extra input streams).
    w_iota = jax.lax.broadcasted_iota(jnp.int32, (W, Wo), 0)
    wo_iota = jax.lax.broadcasted_iota(jnp.int32, (W, Wo), 1)

    for bh in range(bs):
        # Sublane-strided de-interleave: xh[c, ho, w] = x[c, ho*bs + bh, w].
        xh = x_ref[:, pl.ds(bh, Ho, stride=bs), :]           # (Ct, Ho, W)
        xh2 = xh.reshape(Ct * Ho, W)                         # lane dim unchanged
        for bw in range(bs):
            # sel[w, wo] = 1 iff w == wo*bs + bw   (native dtype, exact).
            sel = (w_iota == wo_iota * bs + bw).astype(x_ref.dtype)
            # Single flattened, non-batched matmul does the lane de-interleave:
            #   y2[(c,ho), wo] = x[c, ho*bs + bh, wo*bs + bw]
            y2 = jnp.dot(xh2, sel, preferred_element_type=jnp.float32)
            o_ref[bh * bs + bw] = y2.reshape(Ct, Ho, Wo).astype(o_ref.dtype)


def _pick_channel_tile(C, H, W, itemsize, budget_bytes=2 << 20):
    """Largest divisor of C whose (Ct, H, W) input block fits the budget."""
    Ct = C
    while Ct > 1 and Ct * H * W * itemsize > budget_bytes:
        Ct -= 1
        while Ct > 1 and C % Ct != 0:
            Ct -= 1
    return Ct


def space_to_depth(x, block_size):
    N, C, H, W = x.shape
    bs = block_size
    assert H % bs == 0 and W % bs == 0
    Ho, Wo = H // bs, W // bs

    Ct = _pick_channel_tile(C, H, W, x.dtype.itemsize)
    n_ct = C // Ct

    kernel = functools.partial(_space_to_depth_kernel, bs=bs)

    out5 = pl.pallas_call(
        kernel,
        out_shape=jax.ShapeDtypeStruct((N, bs * bs, C, Ho, Wo), x.dtype),
        grid=(N, n_ct),
        in_specs=[
            pl.BlockSpec((None, Ct, H, W), lambda n, ci: (n, ci, 0, 0)),
        ],
        out_specs=pl.BlockSpec(
            (None, bs * bs, Ct, Ho, Wo), lambda n, ci: (n, 0, ci, 0, 0)),
        compiler_params=pltpu.CompilerParams(
            dimension_semantics=("parallel", "parallel")),
    )(x)

    # Free row-major reshape: (N, bs*bs, C, Ho, Wo) -> (N, C*bs*bs, Ho, Wo)
    # with channel index (bh*bs + bw)*C + c, matching the PyTorch module.
    return out5.reshape(N, C * bs * bs, Ho, Wo)


def _reference_space_to_depth(x, bs):
    N, C, H, W = x.shape
    x = x.reshape(N, C, H // bs, bs, W // bs, bs)
    x = jnp.transpose(x, (0, 3, 5, 1, 2, 4))
    return x.reshape(N, C * bs * bs, H // bs, W // bs)


if __name__ == "__main__":
    key = jax.random.PRNGKey(0)
    x = jax.random.normal(key, (2, 4, 16, 16), dtype=jnp.float32)
    block_size = 2

    y = space_to_depth(x, block_size)
    jax.block_until_ready(y)

    y_ref = _reference_space_to_depth(x, block_size)
    assert y.shape == y_ref.shape, (y.shape, y_ref.shape)
    assert jnp.allclose(y, y_ref), "Pallas SpaceToDepth mismatch vs reference"
    print("KERNEL_OK")
</pallas_src>

<mosaic_0001>
module attributes {stable_mosaic.version = 11 : i64} {
  func.func @_space_to_depth_kernel(%arg0: i32, %arg1: i32, %arg2: memref<1x4x16x16xf32, #tpu.memory_space<vmem>>, %arg3: memref<1x4x4x8x8xf32, #tpu.memory_space<vmem>>) attributes {dimension_semantics = [#tpu.dimension_semantics<parallel>, #tpu.dimension_semantics<parallel>], iteration_bounds = array<i64: 2, 1>, scalar_prefetch = 0 : i64, scratch_operands = 0 : i64, tpu.core_type = #tpu.core_type<tc>, window_params = [{transform_indices = @transform_0, window_bounds = array<i64: 1, 4, 16, 16>}, {transform_indices = @transform_1, window_bounds = array<i64: 1, 4, 4, 8, 8>}]} {
    %0 = tpu.iota {dimensions = array<i32: 0>} : vector<16x8xi32>
    %1 = tpu.iota {dimensions = array<i32: 1>} : vector<16x8xi32>
    %c0 = arith.constant 0 : index
    %c0_0 = arith.constant 0 : index
    %c0_1 = arith.constant 0 : index
    %c0_2 = arith.constant 0 : index
    %2 = tpu.strided_load %arg2[%c0, %c0_0, %c0_1, %c0_2] {strides = array<i32: 1, 1, 2, 1>} : memref<1x4x16x16xf32, #tpu.memory_space<vmem>>, vector<1x4x8x16xf32>
    %3 = vector.shape_cast %2 : vector<1x4x8x16xf32> to vector<4x8x16xf32>
    %4 = vector.shape_cast %3 : vector<4x8x16xf32> to vector<32x16xf32>
    %c2_i32 = arith.constant 2 : i32
    %5 = vector.broadcast %c2_i32 : i32 to vector<16x8xi32>
    %6 = arith.muli %1, %5 : vector<16x8xi32>
    %c0_i32 = arith.constant 0 : i32
    %7 = vector.broadcast %c0_i32 : i32 to vector<16x8xi32>
    %8 = arith.addi %6, %7 : vector<16x8xi32>
    %9 = arith.cmpi eq, %0, %8 : vector<16x8xi32>
    %10 = arith.extui %9 : vector<16x8xi1> to vector<16x8xi32>
    %11 = arith.sitofp %10 : vector<16x8xi32> to vector<16x8xf32>
    %cst = arith.constant dense<0.000000e+00> : vector<32x8xf32>
    %12 = tpu.matmul %4, %11, %cst {dimension_numbers = #tpu.dot_dimension_numbers<[1], [0], [0], [1], [0, 0, 1, 1], [], []>} : vector<32x16xf32>, vector<16x8xf32>, vector<32x8xf32> -> vector<32x8xf32>
    %13 = vector.shape_cast %12 : vector<32x8xf32> to vector<4x8x8xf32>
    %c0_3 = arith.constant 0 : index
    %c0_4 = arith.constant 0 : index
    %c0_5 = arith.constant 0 : index
    %c0_6 = arith.constant 0 : index
    %c0_7 = arith.constant 0 : index
    %14 = vector.load %arg3[%c0_3, %c0_4, %c0_5, %c0_6, %c0_7] : memref<1x4x4x8x8xf32, #tpu.memory_space<vmem>>, vector<1x1x4x8x8xf32>
    %15 = vector.shape_cast %14 : vector<1x1x4x8x8xf32> to vector<4x8x8xf32>
    %16 = vector.shape_cast %13 : vector<4x8x8xf32> to vector<1x1x4x8x8xf32>
    tpu.vector_store %arg3[%c0_3, %c0_4, %c0_5, %c0_6, %c0_7], %16 {strides = array<i32>} : memref<1x4x4x8x8xf32, #tpu.memory_space<vmem>>, vector<1x1x4x8x8xf32>,
    %c2_i32_8 = arith.constant 2 : i32
    %17 = vector.broadcast %c2_i32_8 : i32 to vector<16x8xi32>
    %18 = arith.muli %1, %17 : vector<16x8xi32>
    %c1_i32 = arith.constant 1 : i32
    %19 = vector.broadcast %c1_i32 : i32 to vector<16x8xi32>
    %20 = arith.addi %18, %19 : vector<16x8xi32>
    %21 = arith.cmpi eq, %0, %20 : vector<16x8xi32>
    %22 = arith.extui %21 : vector<16x8xi1> to vector<16x8xi32>
    %23 = arith.sitofp %22 : vector<16x8xi32> to vector<16x8xf32>
    %cst_9 = arith.constant dense<0.000000e+00> : vector<32x8xf32>
    %24 = tpu.matmul %4, %23, %cst_9 {dimension_numbers = #tpu.dot_dimension_numbers<[1], [0], [0], [1], [0, 0, 1, 1], [], []>} : vector<32x16xf32>, vector<16x8xf32>, vector<32x8xf32> -> vector<32x8xf32>
    %25 = vector.shape_cast %24 : vector<32x8xf32> to vector<4x8x8xf32>
    %c0_10 = arith.constant 0 : index
    %c1 = arith.constant 1 : index
    %c0_11 = arith.constant 0 : index
    %c0_12 = arith.constant 0 : index
    %c0_13 = arith.constant 0 : index
    %26 = vector.load %arg3[%c0_10, %c1, %c0_11, %c0_12, %c0_13] : memref<1x4x4x8x8xf32, #tpu.memory_space<vmem>>, vector<1x1x4x8x8xf32>
    %27 = vector.shape_cast %26 : vector<1x1x4x8x8xf32> to vector<4x8x8xf32>
    %28 = vector.shape_cast %25 : vector<4x8x8xf32> to vector<1x1x4x8x8xf32>
    tpu.vector_store %arg3[%c0_10, %c1, %c0_11, %c0_12, %c0_13], %28 {strides = array<i32>} : memref<1x4x4x8x8xf32, #tpu.memory_space<vmem>>, vector<1x1x4x8x8xf32>,
    %c0_14 = arith.constant 0 : index
    %c0_15 = arith.constant 0 : index
    %c1_16 = arith.constant 1 : index
    %c0_17 = arith.constant 0 : index
    %29 = tpu.strided_load %arg2[%c0_14, %c0_15, %c1_16, %c0_17] {strides = array<i32: 1, 1, 2, 1>} : memref<1x4x16x16xf32, #tpu.memory_space<vmem>>, vector<1x4x8x16xf32>
    %30 = vector.shape_cast %29 : vector<1x4x8x16xf32> to vector<4x8x16xf32>
    %31 = vector.shape_cast %30 : vector<4x8x16xf32> to vector<32x16xf32>
    %c2_i32_18 = arith.constant 2 : i32
    %32 = vector.broadcast %c2_i32_18 : i32 to vector<16x8xi32>
    %33 = arith.muli %1, %32 : vector<16x8xi32>
    %c0_i32_19 = arith.constant 0 : i32
    %34 = vector.broadcast %c0_i32_19 : i32 to vector<16x8xi32>
    %35 = arith.addi %33, %34 : vector<16x8xi32>
    %36 = arith.cmpi eq, %0, %35 : vector<16x8xi32>
    %37 = arith.extui %36 : vector<16x8xi1> to vector<16x8xi32>
    %38 = arith.sitofp %37 : vector<16x8xi32> to vector<16x8xf32>
    %cst_20 = arith.constant dense<0.000000e+00> : vector<32x8xf32>
    %39 = tpu.matmul %31, %38, %cst_20 {dimension_numbers = #tpu.dot_dimension_numbers<[1], [0], [0], [1], [0, 0, 1, 1], [], []>} : vector<32x16xf32>, vector<16x8xf32>, vector<32x8xf32> -> vector<32x8xf32>
    %40 = vector.shape_cast %39 : vector<32x8xf32> to vector<4x8x8xf32>
    %c0_21 = arith.constant 0 : index
    %c2 = arith.constant 2 : index
    %c0_22 = arith.constant 0 : index
    %c0_23 = arith.constant 0 : index
    %c0_24 = arith.constant 0 : index
    %41 = vector.load %arg3[%c0_21, %c2, %c0_22, %c0_23, %c0_24] : memref<1x4x4x8x8xf32, #tpu.memory_space<vmem>>, vector<1x1x4x8x8xf32>
    %42 = vector.shape_cast %41 : vector<1x1x4x8x8xf32> to vector<4x8x8xf32>
    %43 = vector.shape_cast %40 : vector<4x8x8xf32> to vector<1x1x4x8x8xf32>
    tpu.vector_store %arg3[%c0_21, %c2, %c0_22, %c0_23, %c0_24], %43 {strides = array<i32>} : memref<1x4x4x8x8xf32, #tpu.memory_space<vmem>>, vector<1x1x4x8x8xf32>,
    %c2_i32_25 = arith.constant 2 : i32
    %44 = vector.broadcast %c2_i32_25 : i32 to vector<16x8xi32>
    %45 = arith.muli %1, %44 : vector<16x8xi32>
    %c1_i32_26 = arith.constant 1 : i32
    %46 = vector.broadcast %c1_i32_26 : i32 to vector<16x8xi32>
    %47 = arith.addi %45, %46 : vector<16x8xi32>
    %48 = arith.cmpi eq, %0, %47 : vector<16x8xi32>
    %49 = arith.extui %48 : vector<16x8xi1> to vector<16x8xi32>
    %50 = arith.sitofp %49 : vector<16x8xi32> to vector<16x8xf32>
    %cst_27 = arith.constant dense<0.000000e+00> : vector<32x8xf32>
    %51 = tpu.matmul %31, %50, %cst_27 {dimension_numbers = #tpu.dot_dimension_numbers<[1], [0], [0], [1], [0, 0, 1, 1], [], []>} : vector<32x16xf32>, vector<16x8xf32>, vector<32x8xf32> -> vector<32x8xf32>
    %52 = vector.shape_cast %51 : vector<32x8xf32> to vector<4x8x8xf32>
    %c0_28 = arith.constant 0 : index
    %c3 = arith.constant 3 : index
    %c0_29 = arith.constant 0 : index
    %c0_30 = arith.constant 0 : index
    %c0_31 = arith.constant 0 : index
    %53 = vector.load %arg3[%c0_28, %c3, %c0_29, %c0_30, %c0_31] : memref<1x4x4x8x8xf32, #tpu.memory_space<vmem>>, vector<1x1x4x8x8xf32>
    %54 = vector.shape_cast %53 : vector<1x1x4x8x8xf32> to vector<4x8x8xf32>
    %55 = vector.shape_cast %52 : vector<4x8x8xf32> to vector<1x1x4x8x8xf32>
    tpu.vector_store %arg3[%c0_28, %c3, %c0_29, %c0_30, %c0_31], %55 {strides = array<i32>} : memref<1x4x4x8x8xf32, #tpu.memory_space<vmem>>, vector<1x1x4x8x8xf32>,
    return
  }
  func.func @transform_0(%arg0: i32, %arg1: i32) -> (i32, i32, i32, i32) {
    %c0_i32 = arith.constant 0 : i32
    %c0_i32_0 = arith.constant 0 : i32
    %c0_i32_1 = arith.constant 0 : i32
    return %arg0, %arg1, %c0_i32, %c0_i32_0 : i32, i32, i32, i32
  }
  func.func @transform_1(%arg0: i32, %arg1: i32) -> (i32, i32, i32, i32, i32) {
    %c0_i32 = arith.constant 0 : i32
    %c0_i32_0 = arith.constant 0 : i32
    %c0_i32_1 = arith.constant 0 : i32
    %c0_i32_2 = arith.constant 0 : i32
    return %arg0, %c0_i32, %arg1, %c0_i32_0, %c0_i32_1 : i32, i32, i32, i32, i32
  }
}

</mosaic_0001>

<bundles_post_ra>
// kernel: tpu_custom_call.1
= control target key start
LH: loop header
LB: loop body
LE: loop exit
PB: predicated region body
PF: predicated region fallthrough
CT: control target
= control target key end

     0   :  { %6 = vsyncpa [#allocation3], 0  ;;  %s900_s0 = inlined_call_operand.hbm [shape: f32[2,4,16,16], index: 0, kind: input, shape index: {}]   ;;  %s901_s1 = inlined_call_operand.hbm [shape: f32[2,4,4,8,8], index: 1, kind: output, shape index: {}]  }
   0x1   :  { %8 = vsyncpa [#allocation3 + $0x1], 0 }
   0x2   :  { %9 = vsyncpa [#allocation4], 0 }
   0x3   :  { %11 = vsyncpa [#allocation4 + $0x1], 0  ;;  %s718_s6 = smov 0   ;;  %s720_s7 = smov 0  }
   0x4   :  { %s722_s8 = smov 0   ;;  %s724_s9 = smov 0  }
   0x5   :  { %s726_s10 = smov 0   ;;  %s728_s11 = smov 0  }
   0x6 LB: > { %s458_s12 = sadd.s32 4294967295, %s701_s11   ;;  %s459_s13 = sadd.s32 4294967294, %s701_s11   ;;  %s701_s11 = sphi %s728_s11, %s17_s11   ;;  %s697_s10 = sphi %s726_s10, %s910_s10   ;;  %s693_s9 = sphi %s724_s9, %s909_s9   ;;  %s689_s8 = sphi %s722_s8, %s908_s8   ;;  %s685_s7 = sphi %s720_s7, %s907_s7   ;;  %s681_s6 = sphi %s718_s6, %s906_s6  }
   0x7   : > { %s29_s14 = sadd.s32 1, %s697_s10  ;;  %s38_s15 = sadd.s32 1, %s689_s8 }
   0x8   : > { %p31_p0 = scmp.ge.s32.totalorder %s29_s14, 2  ;;  %p45_p1 = scmp.ne.s32.totalorder %s689_s8, %s685_s7 }
   0x9   : > { %p46_p2 = scmp.eq.s32.totalorder %s701_s11, 0  ;;  %p51_p3 = scmp.ne.s32.totalorder %s685_s7, %s681_s6 }
   0xa   : > { %s912_s14 = smov (%p31_p0, %s29_s14), 0  ;;  %p52_p5 = scmp.eq.s32.totalorder %s458_s12, 0 }
   0xb   : > { %p759_p4 = por %p46_p2, %p45_p1  ;;  %s33_s17 = ssub.s32 %s697_s10, %s912_s14 }
   0xc   : > { %p77_p6 = scmp.eq.s32.totalorder %s458_s12, 1  ;;  %p36_p7 = scmp.eq.s32.totalorder %s33_s17, 0 }
   0xd   : > { %p765_p8 = por %p52_p5, %p51_p3  ;;  %p83_p10 = scmp.eq.s32.totalorder %s459_s13, 1 }
   0xe   : > { %p769_p9 = por %p77_p6, %p45_p1  ;;  %p461_p12 = scmp.ge.s32.totalorder %s701_s11, 2 }
   0xf   : > { %s774_s20 = scalar_select %p36_p7, %s689_s8, %s38_s15  }
  0x10   : > { %p776_p11 = por %p83_p10, %p51_p3  ;;  %p534_p13 = scmp.lt.s32.totalorder %s701_s11, 2 }
  0x11   : > { %s103_s22 = sand.u32 1, %s689_s8   ;;  %s520_s24 = sshll.u32 %s697_s10, 6 }
  0x12   : > { %s462_s23 = sshll.u32 %s103_s22, 6  ;;  %s115_s27 = scalar_lea.hbm %s900_s0, %s520_s24 }
  0x13   : > { %s107_s28 = scalar_lea.vmem [#allocation2], %s462_s23  ;;  %s116_s30 = sshll.u32 %s115_s27, 4  ;;  %s117_s30 = int_to_ptr.hbm [resolvable:$true] %s116_s30 }
  0x14   : > { %s118_s29 = sshll.u32 %s107_s28, 4  ;;  %p527_p0 = pnand %p534_p13, %p759_p4  ;;  %s119_s29 = int_to_ptr.vmem [resolvable:$true] %s118_s29 }
  0x15   : > { %p465_p1 = scmp.ge.s32.totalorder %s701_s11, 1  ;;  %s104_s2 = scalar_lea.sflag [#allocation3], %s103_s22 }
  0x16   : > { %s703_s3 = smov 128   ;;  %s704_s4 = smov 8  }
  0x17   : > { %529 = dma.hbm_to_vmem [thread:$0]  (!%p527_p0), %s117_s30, 1024, %s119_s29, %s104_s2, %s703_s3, %s703_s3, %s704_s4  }
  0x18   : > { %p126_p2 = scmp.lt.s32.totalorder %s701_s11, 3 }
  0x1a   : > { %p127_p3 = pnand %p465_p1, %p126_p2 }
  0x1b   : > { %s792_s5 = sand.u32 (!%p127_p3), 1, %s685_s7  }
  0x1c   : > { %130 = sbr.rel (%p127_p3) target bundleno = 206 (0xce), region = 24  ;;  %s466_s12 = sshll.u32 (!%p127_p3), %s792_s5, 6 }
  0x1d   : > { %s133_s13 = scalar_lea.sflag (!%p127_p3), [#allocation3], %s792_s5  ;;  %s796_s15 = scalar_lea.vmem (!%p127_p3), [#allocation2], %s466_s12 }
  0x21   : > { %672 = dma.done.wait (%p765_p8), %s133_s13, 1024  }
  0x22   : > { %674 = vsyncadd (%p765_p8), %s133_s13, 4294966272  ;;  %v158_v0 = vlaneseq  ;;  %v705_v6 = vmov 1.0   ;;  %vm177_vm2 = vcmask 130048   ;;  %v491_v7 = vld [vmem:[%s796_s15 + $0x1] ss:$2 sm:$0xff]  ;;  %s467_s16 = sshll.u32 %s792_s5, 7 }
  0x23   : > { %v163_v8 = vld [vmem:[%s796_s15] ss:$2 sm:$0xff]  ;;  %v492_v9 = vld [vmem:[%s796_s15 + $0x11] ss:$2 sm:$0xff]  ;;  %v468_v10 = vld [vmem:[%s796_s15 + $0x10] ss:$2 sm:$0xff] }
  0x24   : > { %v159_v1 = vshrl.u32 %v158_v0, 7  ;;  %v162_v2 = vand.u32 127, %v158_v0  ;;  %v493_v11 = vld [vmem:[%s796_s15 + $0x21] ss:$2 sm:$0xff]  ;;  %v469_v12 = vld [vmem:[%s796_s15 + $0x20] ss:$2 sm:$0xff] }
  0x25   : > { %v494_v13 = vld [vmem:[%s796_s15 + $0x31] ss:$2 sm:$0xff]  ;;  %v470_v14 = vld [vmem:[%s796_s15 + $0x30] ss:$2 sm:$0xff]  ;;  %vm219_vm5 = vcmask 64512   ;;  %s827_s17 = scalar_lea.vmem [#allocation5], %s467_s16 }
  0x26   : > { %v160_v3 = vadd.s32 8, %v159_v1  ;;  %v170_v4 = vmul.u32 2, %v162_v2  ;;  %s521_s18 = sshll.u32 %s693_s9, 7  ;;  %s368_s25 = sshll.u32 %s827_s17, 4  ;;  %s369_s25 = int_to_ptr.vmem [resolvable:$true] %s368_s25 }
  0x27   : > { %s367_s24 = scalar_lea.hbm %s901_s1, %s521_s18  ;;  %s354_s9 = scalar_lea.sflag [#allocation4], %s792_s5 }
  0x28   : > { %vm172_vm0 = vcmp.eq.s32.totalorder %v160_v3, %v170_v4  ;;  %v224_v5 = vadd.s32 1, %v170_v4  ;;  %vm171_vm1 = vcmp.eq.s32.totalorder %v159_v1, %v170_v4  ;;  %s370_s26 = sshll.u32 %s367_s24, 4  ;;  %s639_s2 = scalar_lea.hbm %s901_s1, 256  ;;  %s371_s26 = int_to_ptr.hbm [resolvable:$true] %s370_s26 }
  0x29   : > { %495 = vmatpush.msk.msra.mxu2 %vm172_vm0, %v705_v6  ;;  %473 = vmatpush.msk.msra.mxu0 %vm172_vm0, %v705_v6  ;;  %s633_s27 = sshra.s32 %s371_s26, 4  ;;  %s634_s27 = int_to_ptr.hbm [resolvable:$true] %s633_s27 }
  0x2a   : > { %vm226_vm3 = vcmp.eq.s32.totalorder %v160_v3, %v224_v5  ;;  %vm225_vm4 = vcmp.eq.s32.totalorder %v159_v1, %v224_v5  ;;  %s635_s28 = scalar_lea.hbm %s634_s27, 128  ;;  %p640_p7 = scmp.lt.s32.totalorder %s634_s27, %s901_s1 }
  0x2b   : > { %505 = vmatpush.msk.msra.mxu3 %vm226_vm3, %v705_v6  ;;  %496 = vmatpush.msk.msra.mxu2 %vm171_vm1, %v705_v6  ;;  %p636_p4 = scmp.ne.s32.totalorder %s634_s27, %s635_s28  ;;  %p641_p8 = scmp.lt.s32.totalorder %s639_s2, %s635_s28 }
  0x2c   : > { %497 = vmatmul.msk.f32.vlgmr.msra.gmra.mxu2 %vm177_vm2, %v491_v7  ;;  %481 = vmatpush.msk.msra.mxu1 %vm226_vm3, %v705_v6 }
  0x2d   : > { %506 = vmatpush.msk.msra.mxu3 %vm225_vm4, %v705_v6  ;;  %474 = vmatpush.msk.msra.mxu0 %vm171_vm1, %v705_v6  ;;  %p637_p5 = pnand %p636_p4, %p769_p9  ;;  %p642_p10 = por %p641_p8, %p640_p7 }
  0x2e   : > { %507 = vmatmul.msk.f32.vlgmr.msra.gmra.mxu3 %vm177_vm2, %v491_v7  ;;  %482 = vmatpush.msk.msra.mxu1 %vm225_vm4, %v705_v6 }
  0x2f   : > { %475 = vmatmul.msk.f32.vlgmr.msra.gmra.mxu0 %vm177_vm2, %v163_v8  ;;  %483 = vmatmul.msk.f32.vlgmr.msra.gmra.mxu1 %vm177_vm2, %v163_v8  ;;  %p638_p6 = pneg %p637_p5 }
  0x31   : > { %p643_p13 = pnand %p642_p10, %p638_p6 }
  0x34   : > { %498 = vmatmul.msk.f32.gmra.mxu2 %vm177_vm2, %v492_v9 }
  0x36   : > { %508 = vmatmul.msk.f32.gmra.mxu3 %vm177_vm2, %v492_v9 }
  0x37   : > { %476 = vmatmul.msk.f32.gmra.mxu0 %vm177_vm2, %v468_v10  ;;  %484 = vmatmul.msk.f32.gmra.mxu1 %vm177_vm2, %v468_v10 }
  0x3c   : > { %499 = vmatmul.msk.f32.gmra.mxu2 %vm177_vm2, %v493_v11 }
  0x3e   : > { %509 = vmatmul.msk.f32.gmra.mxu3 %vm177_vm2, %v493_v11 }
  0x3f   : > { %477 = vmatmul.msk.f32.gmra.mxu0 %vm177_vm2, %v469_v12  ;;  %485 = vmatmul.msk.f32.gmra.mxu1 %vm177_vm2, %v469_v12 }
  0x44   : > { %500 = vmatmul.msk.f32.gmra.mxu2 %vm177_vm2, %v494_v13 }
  0x46   : > { %510 = vmatmul.msk.f32.gmra.mxu3 %vm177_vm2, %v494_v13 }
  0x47   : > { %478 = vmatmul.msk.f32.gmra.mxu0 %vm177_vm2, %v470_v14  ;;  %486 = vmatmul.msk.f32.gmra.mxu1 %vm177_vm2, %v470_v14 }
  0xac   : > { %v207_v15 = vpop.f32.mrf.mxu0  ;;  %v248_v16 = vpop.f32.mrf.mxu1 }
  0xad   : > { %220 = vst.msk [vmem:[%s827_s17] sm:$0xff] %vm219_vm5, %v207_v15 }
  0xae   : > { %487 = vst.msk [vmem:[%s827_s17 + $0x20] sm:$0xff] %vm219_vm5, %v248_v16 }
  0xaf   : > { %v302_v17 = vpop.f32.mrf.mxu2 }
  0xb0   : > { %501 = vst.msk [vmem:[%s827_s17 + $0x40] sm:$0xff] %vm219_vm5, %v302_v17 }
  0xb1   : > { %v336_v18 = vpop.f32.mrf.mxu3 }
  0xb2   : > { %511 = vst.msk [vmem:[%s827_s17 + $0x60] sm:$0xff] %vm219_vm5, %v336_v18 }
  0xb4   : > { %v210_v19 = vpop.f32.mrf.mxu0  ;;  %v251_v20 = vpop.f32.mrf.mxu1 }
  0xb5   : > { %221 = vst.msk [vmem:[%s827_s17 + $0x8] sm:$0xff] %vm219_vm5, %v210_v19 }
  0xb6   : > { %488 = vst.msk [vmem:[%s827_s17 + $0x28] sm:$0xff] %vm219_vm5, %v251_v20 }
  0xb7   : > { %v305_v21 = vpop.f32.mrf.mxu2 }
  0xb8   : > { %502 = vst.msk [vmem:[%s827_s17 + $0x48] sm:$0xff] %vm219_vm5, %v305_v21 }
  0xb9   : > { %v339_v22 = vpop.f32.mrf.mxu3 }
  0xba   : > { %512 = vst.msk [vmem:[%s827_s17 + $0x68] sm:$0xff] %vm219_vm5, %v339_v22 }
  0xbc   : > { %v213_v23 = vpop.f32.mrf.mxu0  ;;  %v254_v24 = vpop.f32.mrf.mxu1 }
  0xbd   : > { %222 = vst.msk [vmem:[%s827_s17 + $0x10] sm:$0xff] %vm219_vm5, %v213_v23 }
  0xbe   : > { %489 = vst.msk [vmem:[%s827_s17 + $0x30] sm:$0xff] %vm219_vm5, %v254_v24 }
  0xbf   : > { %v308_v25 = vpop.f32.mrf.mxu2 }
  0xc0   : > { %503 = vst.msk [vmem:[%s827_s17 + $0x50] sm:$0xff] %vm219_vm5, %v308_v25 }
  0xc1   : > { %v342_v26 = vpop.f32.mrf.mxu3 }
  0xc2   : > { %513 = vst.msk [vmem:[%s827_s17 + $0x70] sm:$0xff] %vm219_vm5, %v342_v26 }
  0xc4   : > { %v216_v27 = vpop.f32.mrf.mxu0  ;;  %v257_v28 = vpop.f32.mrf.mxu1 }
  0xc5   : > { %223 = vst.msk [vmem:[%s827_s17 + $0x18] sm:$0xff] %vm219_vm5, %v216_v27 }
  0xc6   : > { %490 = vst.msk [vmem:[%s827_s17 + $0x38] sm:$0xff] %vm219_vm5, %v257_v28 }
  0xc7   : > { %v311_v29 = vpop.f32.mrf.mxu2 }
  0xc8   : > { %504 = vst.msk [vmem:[%s827_s17 + $0x58] sm:$0xff] %vm219_vm5, %v311_v29 }
  0xc9   : > { %v345_v30 = vpop.f32.mrf.mxu3 }
  0xca   : > { %514 = vst.msk [vmem:[%s827_s17 + $0x78] sm:$0xff] %vm219_vm5, %v345_v30 }
  0xcb   : > { %646 = shalt.err (!%p643_p13)
}
  0xcc   : > { %s706_s5 = smov 128   ;;  %s707_s12 = smov 8  }
  0xcd   : > { %524 = dma.vmem_to_hbm [thread:$0]  (%p769_p9), %s369_s25, 2048, %s371_s26, %s354_s9, %s706_s5, %s706_s5, %s707_s12  }
  0xce PF: > { %s385_s13 = sand.u32 1, %s681_s6   ;;  %p531_p0 = pnand %p461_p12, %p776_p11 }
  0xcf   : > { %s386_s15 = scalar_lea.sflag [#allocation4], %s385_s13 }
  0xd0   : > { %p532_p1 = pneg %p531_p0 }
  0xd2   : > { %676 = dma.done.wait (%p532_p1), %s386_s15, 2048  }
  0xd3   : > { %678 = vsyncadd (%p532_p1), %s386_s15, 4294965248  ;;  %s17_s11 = sadd.s32 1, %s701_s11   ;;  %s906_s6 = smov %s685_s7 }
  0xd4   : > { %p14_p2 = scmp.ge.s32.totalorder %s17_s11, 4   ;;  %s907_s7 = smov %s689_s8 }
  0xd5   : > { %s908_s8 = smov %s774_s20  ;;  %s909_s9 = smov %s697_s10 }
  0xd6   : > { %s910_s10 = smov %s912_s14  ;;  %16 = sbr.rel (!%p14_p2) target bundleno = 6 (0x6), region = 79 }
  0xdb   :  { %392 = vsyncpa [#allocation3], 1 }
  0xdc   :  { %394 = vsyncpa [#allocation3 + $0x1], 1 }
  0xdd   :  { %395 = vsyncpa [#allocation4], 1 }
  0xde   :  { %397 = vsyncpa [#allocation4 + $0x1], 1 }

</bundles_post_ra>
